<compile_context>
chip_gen: v7x
topology: tpu7x:2x2x1
jax: 0.10.0
libtpu: 0.0.40
codegen_flags: <defaults>
</compile_context>

<pallas_src>
import jax
import jax.numpy as jnp
from jax.experimental import pallas as pl
from jax.experimental.pallas import tpu as pltpu

LANE = 128                          # vreg lane width (fast axis)
TARGET_BLOCK_BYTES = 2 * 1024 * 1024  # ~2 MiB/buffer -> ~8 MiB pipelined VMEM


def _sublane_packing(dtype):
    """Rows per fully-packed vreg tile: 8 for 4-byte, 16 for 2-byte, 32 for 1-byte."""
    itemsize = jnp.dtype(dtype).itemsize
    return max(8, 32 // itemsize)


def _round_up(a, b):
    return ((a + b - 1) // b) * b


def relu1_kernel(x_ref, o_ref):
    # Elementwise clamp(x, 0, 1) on the VPU; lane/sublane-dense tile.
    x = x_ref[...]
    zero = jnp.zeros((), dtype=x.dtype)
    one = jnp.ones((), dtype=x.dtype)
    o_ref[...] = jnp.minimum(jnp.maximum(x, zero), one)


def _relu1_2d(x2d, block_rows):
    """Run the clamp kernel over a lane-dense [rows, 128] array."""
    rows = x2d.shape[0]
    itemsize = jnp.dtype(x2d.dtype).itemsize
    n = rows * LANE
    grid = (pl.cdiv(rows, block_rows),)
    return pl.pallas_call(
        relu1_kernel,
        out_shape=jax.ShapeDtypeStruct((rows, LANE), x2d.dtype),
        grid=grid,
        in_specs=[pl.BlockSpec((block_rows, LANE), lambda i: (i, 0))],
        out_specs=pl.BlockSpec((block_rows, LANE), lambda i: (i, 0)),
        compiler_params=pltpu.CompilerParams(
            dimension_semantics=("parallel",)),
        cost_estimate=pl.CostEstimate(
            flops=2 * n, transcendentals=0, bytes_accessed=2 * n * itemsize),
    )(x2d)


def relu1_forward(x):
    """ReLU1 (clamp to [0, 1]) of an arbitrary-shaped array via a Pallas kernel."""
    orig_shape = x.shape
    n = x.size
    if n == 0:
        return x

    dtype = x.dtype
    itemsize = jnp.dtype(dtype).itemsize
    packing = _sublane_packing(dtype)
    target_rows = max(packing, TARGET_BLOCK_BYTES // (LANE * itemsize))

    flat = x.reshape(-1)          # free (contiguous) reshape
    rows = n // LANE
    rem = n - rows * LANE

    if rows == 0:
        # Fewer than 128 elements: a kernel launch is pure overhead.
        return jnp.clip(x, 0, 1)

    # Block sizing: largest lane-dense block up to ~2 MiB/buffer, but keep the
    # grid at >=2 steps for larger inputs so megacore can split the work.
    if rows <= 2 * packing:
        block_rows = _round_up(rows, packing)
    else:
        block_rows = min(target_rows, _round_up(pl.cdiv(rows, 2), packing))
        block_rows = max(block_rows, packing)

    # Aligned prefix: no padding needed -- Pallas masks the partial last block.
    main = flat[: rows * LANE].reshape(rows, LANE)
    out_main = _relu1_2d(main, block_rows).reshape(-1)

    if rem == 0:
        return out_main.reshape(orig_shape)

    # Ragged tail (< 128 elements): clamp with plain jnp and stitch back.
    # TODO(synk): fold the tail into the kernel via a masked 1-D store so the
    # concatenate copy disappears for n % 128 != 0.
    tail = jnp.clip(flat[rows * LANE:], 0, 1)
    return jnp.concatenate([out_main, tail]).reshape(orig_shape)


def reference_relu1(x):
    return jnp.clip(x, 0, 1)


if __name__ == "__main__":
    key = jax.random.PRNGKey(0)

    # Main test: NCHW tensor [2, 4, 16, 16], values spanning below 0 and above 1.
    B, C, H, W = 2, 4, 16, 16
    k0, k1, k2 = jax.random.split(key, 3)
    x = 1.5 * jax.random.normal(k0, (B, C, H, W), dtype=jnp.float32)

    out = jax.block_until_ready(relu1_forward(x))
    ref = reference_relu1(x)
    assert out.shape == x.shape and out.dtype == x.dtype
    assert jnp.array_equal(out, ref), "f32 mismatch vs reference"
    assert float(jnp.min(out)) >= 0.0 and float(jnp.max(out)) <= 1.0

    # bf16 path (dtype-aware sublane packing).
    xb = (1.5 * jax.random.normal(k1, (B, C, H, W), dtype=jnp.float32)).astype(jnp.bfloat16)
    outb = jax.block_until_ready(relu1_forward(xb))
    assert outb.dtype == jnp.bfloat16
    assert jnp.array_equal(outb, reference_relu1(xb)), "bf16 mismatch vs reference"

    # Ragged size (n % 128 != 0) exercises the prefix-kernel + jnp tail path.
    xr = 1.5 * jax.random.normal(k2, (3, 100), dtype=jnp.float32)  # 300 elements
    outr = jax.block_until_ready(relu1_forward(xr))
    assert jnp.array_equal(outr, reference_relu1(xr)), "ragged mismatch vs reference"

    print("KERNEL_OK")
</pallas_src>

<mosaic_0001>
module attributes {stable_mosaic.version = 11 : i64} {
  func.func @relu1_kernel(%arg0: i32, %arg1: memref<16x128xf32, #tpu.memory_space<vmem>>, %arg2: memref<16x128xf32, #tpu.memory_space<vmem>>) attributes {dimension_semantics = [#tpu.dimension_semantics<parallel>], iteration_bounds = array<i64: 1>, scalar_prefetch = 0 : i64, scratch_operands = 0 : i64, tpu.core_type = #tpu.core_type<tc>, window_params = [{transform_indices = @transform_0, window_bounds = array<i64: 16, 128>}, {transform_indices = @transform_1, window_bounds = array<i64: 16, 128>}]} {
    %c0 = arith.constant 0 : index
    %c0_0 = arith.constant 0 : index
    %0 = vector.load %arg1[%c0, %c0_0] : memref<16x128xf32, #tpu.memory_space<vmem>>, vector<16x128xf32>
    %cst = arith.constant 0.000000e+00 : f32
    %1 = vector.broadcast %cst : f32 to vector<16x128xf32>
    %2 = arith.maximumf %0, %1 : vector<16x128xf32>
    %cst_1 = arith.constant 1.000000e+00 : f32
    %3 = vector.broadcast %cst_1 : f32 to vector<16x128xf32>
    %4 = arith.minimumf %2, %3 : vector<16x128xf32>
    %c0_2 = arith.constant 0 : index
    %c0_3 = arith.constant 0 : index
    %5 = vector.load %arg2[%c0_2, %c0_3] : memref<16x128xf32, #tpu.memory_space<vmem>>, vector<16x128xf32>
    tpu.vector_store %arg2[%c0_2, %c0_3], %4 {strides = array<i32>} : memref<16x128xf32, #tpu.memory_space<vmem>>, vector<16x128xf32>,
    return
  }
  func.func @transform_0(%arg0: i32) -> (i32, i32) {
    %c0_i32 = arith.constant 0 : i32
    %c0_i32_0 = arith.constant 0 : i32
    return %arg0, %c0_i32 : i32, i32
  }
  func.func @transform_1(%arg0: i32) -> (i32, i32) {
    %c0_i32 = arith.constant 0 : i32
    %c0_i32_0 = arith.constant 0 : i32
    return %arg0, %c0_i32 : i32, i32
  }
}

</mosaic_0001>

<bundles_post_ra>
// kernel: tpu_custom_call.1
= control target key start
LH: loop header
LB: loop body
LE: loop exit
PB: predicated region body
PF: predicated region fallthrough
CT: control target
= control target key end

     0   :  { %6 = vsyncpa [#allocation3], 0  ;;  %s144_s0 = inlined_call_operand.hbm [shape: f32[16,128], index: 0, kind: input, shape index: {}]   ;;  %s145_s1 = inlined_call_operand.hbm [shape: f32[16,128], index: 1, kind: output, shape index: {}]  }
   0x1   :  { %7 = vsyncpa [#allocation4], 0  ;;  %s100_s6 = smov [#allocation2]   ;;  %s52_s10 = scalar_lea.hbm %s144_s0, 256 }
   0x2   :  { %s13_s7 = sshll.u32 %s100_s6, 4  ;;  %p53_p0 = scmp.ne.s32.totalorder %s144_s0, %s52_s10  ;;  %s14_s7 = int_to_ptr.vmem [resolvable:$true] %s13_s7 }
   0x3   :  { %p56_p1 = scmp.lt.u32.totalorder %s52_s10, %s144_s0 }
   0x5   :  { %p58_p2 = pnand %p56_p1, %p53_p0 }
   0x7   :  { %61 = shalt.err (!%p58_p2)
}
   0x8   :  { %s62_s15 = scalar_lea.vmem %s14_s7, 256  ;;  %p67_p4 = scmp.lt.s32.totalorder %s14_s7, %s14_s7 }
   0x9   :  { %p63_p3 = scmp.ne.s32.totalorder %s14_s7, %s62_s15  ;;  %p68_p5 = scmp.lt.s32.totalorder %s62_s15, %s62_s15 }
   0xb   :  { %p69_p6 = por %p68_p5, %p67_p4 }
   0xd   :  { %p70_p7 = pnand %p69_p6, %p63_p3 }
   0xf   :  { %73 = shalt.err (!%p70_p7)
}
  0x10   :  { %s101_s16 = smov 128   ;;  %s102_s17 = smov 8  }
  0x11   :  { %19 = dma.hbm_to_vmem [thread:$0]  %s144_s0, 256, %s14_s7, [#allocation3], %s101_s16, %s101_s16, %s102_s17  }
  0x12   :  { %96 = dma.done.wait [#allocation3], 256  }
  0x13   :  { %97 = vsyncadd [#allocation3], 4294967040  ;;  %v23_v0 = vld [vmem:[#allocation2] sm:$0xff]  ;;  %v24_v1 = vld [vmem:[#allocation2 + $0x8] sm:$0xff]  ;;  %s103_s20 = smov [#allocation5]  }
  0x14   :  { %s36_s21 = sshll.u32 %s103_s20, 4  ;;  %v25_v2 = vmax.f32 %v23_v0, 0.0  ;;  %v26_v3 = vmax.f32 %v24_v1, 0.0  ;;  %s37_s21 = int_to_ptr.vmem [resolvable:$true] %s36_s21 }
  0x15   :  { %s74_s22 = scalar_lea.vmem %s37_s21, 256  ;;  %p79_p9 = scmp.lt.s32.totalorder %s37_s21, %s37_s21 }
  0x16   :  { %v27_v4 = vmin.f32 %v25_v2, 1.0  ;;  %v28_v5 = vmin.f32 %v26_v3, 1.0  ;;  %p75_p8 = scmp.ne.s32.totalorder %s37_s21, %s74_s22  ;;  %p80_p10 = scmp.lt.s32.totalorder %s74_s22, %s74_s22 }
  0x18   :  { %29 = vst [vmem:[#allocation5] sm:$0xff] %v27_v4  ;;  %30 = vst [vmem:[#allocation5 + $0x8] sm:$0xff] %v28_v5  ;;  %p81_p11 = por %p80_p10, %p79_p9 }
  0x1a   :  { %p82_p12 = pnand %p81_p11, %p75_p8 }
  0x1c   :  { %85 = shalt.err (!%p82_p12)
}
  0x1d   :  { %s86_s24 = scalar_lea.hbm %s145_s1, 256 }
  0x1e   :  { %p87_p13 = scmp.ne.s32.totalorder %s145_s1, %s86_s24  ;;  %p90_p0 = scmp.lt.u32.totalorder %s86_s24, %s145_s1 }
  0x20   :  { %p92_p1 = pnand %p90_p0, %p87_p13 }
  0x22   :  { %95 = shalt.err (!%p92_p1)
}
  0x23   :  { %42 = dma.vmem_to_hbm [thread:$0]  %s37_s21, 256, %s145_s1, [#allocation4], %s101_s16, %s101_s16, %s102_s17  }
  0x24   :  { %98 = dma.done.wait [#allocation4], 256  }
  0x25   :  { %99 = vsyncadd [#allocation4], 4294967040 }
  0x26   :  { %46 = vsyncpa [#allocation3], 1 }
  0x27   :  { %47 = vsyncpa [#allocation4], 1 }

</bundles_post_ra>
